<compile_context>
chip_gen: v7x
topology: tpu7x:2x2x1
jax: 0.10.0
libtpu: 0.0.40
codegen_flags: <defaults>
</compile_context>

<pallas_src>
from functools import partial

import jax
import jax.numpy as jnp
from jax import lax
from jax.experimental import pallas as pl
from jax.experimental.pallas import tpu as pltpu

LANE = 128          # TPU lane width — channel axis is padded to this.
SUBLANE_BF16 = 16   # bf16 sublane packing — causal-pad offset rounded to this.


def _round_up(n, m):
    return (n + m - 1) // m * m


def _pad_axis(a, axis, new_size):
    widths = [(0, 0)] * a.ndim
    widths[axis] = (0, new_size - a.shape[axis])
    return jnp.pad(a, widths)


def _pick_batch_tile(n, l, max_rows=512):
    """Largest divisor of n with nb*l <= max_rows (fill MXU rows, bound VMEM)."""
    nb = 1
    for d in range(1, n + 1):
        if n % d == 0 and d * l <= max_rows:
            nb = d
    return nb


# ---------------------------------------------------------------------------
# Fused whole-network kernel
# ---------------------------------------------------------------------------
def _tcn_fused_kernel(*refs, layers, K, L, NB, CP, pad_off):
    """Whole TemporalConvNet stack for one batch tile, resident in VMEM.

    refs layout (flat, in order):
      x_ref : (NB, L, CP)  bf16      lane-padded channels-last input
      per layer i:
        w1 : (K*CP, CP) bf16         conv1 weight, taps stacked along contraction
        b1 : (1, CP)    f32
        w2 : (K*CP, CP) bf16
        b2 : (1, CP)    f32
        [wd : (CP, CP) bf16, bd : (1, CP) f32]   1x1 downsample (iff cin != cout)
      o_ref : (NB, L, CP)  f32
      h_ref : (NB, pad_off + L, CP) bf16   scratch: causally left-padded conv input
    """
    x_ref = refs[0]
    idx = 1
    per_layer = []
    for has_ds, _ in layers:
        n_refs = 6 if has_ds else 4
        per_layer.append(refs[idx:idx + n_refs])
        idx += n_refs
    o_ref = refs[idx]
    h_ref = refs[idx + 1]

    rows = NB * L

    # Zero the causal-pad rows every grid step: cheap (pad_off*CP bf16) and safe even
    # when the parallel batch axis is sharded across TensorCores (per-core scratch).
    if pad_off > 0:
        h_ref[:, pl.ds(0, pad_off), :] = jnp.zeros((NB, pad_off, CP), h_ref.dtype)

    def causal_conv_relu(src_bf16, w_ref, b_ref, dilation):
        # conv (causal, dilated) -> chomp -> bias -> ReLU  (dropout = identity).
        # The K dilated taps are concatenated along lanes so one MXU matmul carries a
        # K*CP-deep contraction (256-deep for K=2 on the 256-wide v6e/v7x MXU).
        taps = []
        if K > 1:
            h_ref[:, pl.ds(pad_off, L), :] = src_bf16          # aligned bulk store
            for j in range(K - 1):
                shift = (K - 1 - j) * dilation
                taps.append(h_ref[:, pl.ds(pad_off - shift, L), :])
        taps.append(src_bf16)            # last tap (shift 0): skip the VMEM round-trip
        lhs = taps[0] if len(taps) == 1 else jnp.concatenate(taps, axis=-1)
        lhs = lhs.reshape(rows, K * CP)  # fold batch into the MXU rows
        acc = jnp.dot(lhs, w_ref[...], preferred_element_type=jnp.float32)
        acc = acc + b_ref[...]           # bias / ReLU in f32 (VPU math stays f32)
        return jnp.maximum(acc, 0.0).reshape(NB, L, CP)

    act = x_ref[...].astype(jnp.float32)          # running activation, f32
    for li, (has_ds, dilation) in enumerate(layers):
        lr = per_layer[li]
        if has_ds:
            w1, b1, w2, b2, wd, bd = lr
        else:
            w1, b1, w2, b2 = lr
            wd = bd = None
        src = act.astype(jnp.bfloat16)                              # bf16 MXU feed
        h1 = causal_conv_relu(src, w1, b1, dilation)                # conv1+chomp+ReLU
        h2 = causal_conv_relu(h1.astype(jnp.bfloat16), w2, b2, dilation)
        if has_ds:
            res = jnp.dot(src.reshape(rows, CP), wd[...],
                          preferred_element_type=jnp.float32) + bd[...]
            res = res.reshape(NB, L, CP)
        else:
            res = act                              # identity residual (cin == cout)
        act = jnp.maximum(h2 + res, 0.0)           # final block ReLU
    o_ref[...] = act.astype(o_ref.dtype)


# ---------------------------------------------------------------------------
# Wrapper: weight-norm folding, lane padding, single fused pallas_call
# ---------------------------------------------------------------------------
def tcn_forward(x_ncl, params, *, kernel_size=2):
    """TemporalConvNet forward. x_ncl: (N, C, L) in PyTorch Conv1d layout."""
    N, C, L = x_ncl.shape
    K = kernel_size
    num_levels = len(params)
    couts = [p["w1"].shape[-1] for p in params]                    # w1: (K, cin, cout)
    CP = _round_up(max([C] + couts), LANE)

    max_pad = (K - 1) * (2 ** (num_levels - 1)) if num_levels else 0
    pad_off = _round_up(max_pad, SUBLANE_BF16)
    NB = _pick_batch_tile(N, L)

    # Channels-last, lane-padded once, bf16.  Only this input and the final output
    # cross HBM; all inter-block activations live in VMEM.
    x = jnp.transpose(x_ncl, (0, 2, 1)).astype(jnp.float32)
    x = _pad_axis(x, 2, CP).astype(jnp.bfloat16)

    args = [x]
    in_specs = [pl.BlockSpec((NB, L, CP), lambda n: (n, 0, 0))]
    layer_meta = []
    for i, p in enumerate(params):
        dilation = 2 ** i
        has_ds = "wd" in p
        if not has_ds:
            assert p["w1"].shape[1] == p["w1"].shape[2], \
                "identity residual requires cin == cout"
        layer_meta.append((has_ds, dilation))
        w1 = _pad_axis(_pad_axis(p["w1"], 1, CP), 2, CP).reshape(K * CP, CP)
        w2 = _pad_axis(_pad_axis(p["w2"], 1, CP), 2, CP).reshape(K * CP, CP)
        b1 = _pad_axis(p["b1"][None, :], 1, CP).astype(jnp.float32)
        b2 = _pad_axis(p["b2"][None, :], 1, CP).astype(jnp.float32)
        args += [w1.astype(jnp.bfloat16), b1, w2.astype(jnp.bfloat16), b2]
        in_specs += [
            pl.BlockSpec((K * CP, CP), lambda n: (0, 0)),
            pl.BlockSpec((1, CP), lambda n: (0, 0)),
            pl.BlockSpec((K * CP, CP), lambda n: (0, 0)),
            pl.BlockSpec((1, CP), lambda n: (0, 0)),
        ]
        if has_ds:
            wd = _pad_axis(_pad_axis(p["wd"], 0, CP), 1, CP).astype(jnp.bfloat16)
            bd = _pad_axis(p["bd"][None, :], 1, CP).astype(jnp.float32)
            args += [wd, bd]
            in_specs += [pl.BlockSpec((CP, CP), lambda n: (0, 0)),
                         pl.BlockSpec((1, CP), lambda n: (0, 0))]

    kernel = partial(_tcn_fused_kernel, layers=tuple(layer_meta), K=K,
                     L=L, NB=NB, CP=CP, pad_off=pad_off)

    # VMEM budget: double-buffered in/out tiles + resident weights + scratch + live
    # f32 temporaries; clamped to 48 MiB so it keeps headroom inside v7x's 64 MiB
    # per-core VMEM (v5e/v6e have 128 MiB and are nowhere near the limit here).
    w_bytes = sum(int(a.size) * a.dtype.itemsize for a in args[1:])
    act_elems = NB * L * CP
    est = (2 * act_elems * 2 * 2 + 2 * act_elems * 4 + 2 * w_bytes
           + NB * (pad_off + L) * CP * 2 + 12 * act_elems * 4)
    vmem_bytes = int(min(max(est + (16 << 20), 32 << 20), 48 << 20))

    out = pl.pallas_call(
        kernel,
        out_shape=jax.ShapeDtypeStruct((N, L, CP), jnp.float32),
        grid_spec=pltpu.PrefetchScalarGridSpec(
            num_scalar_prefetch=0,
            grid=(N // NB,),
            in_specs=in_specs,
            out_specs=pl.BlockSpec((NB, L, CP), lambda n: (n, 0, 0)),
            scratch_shapes=[pltpu.VMEM((NB, pad_off + L, CP), jnp.bfloat16)],
        ),
        compiler_params=pltpu.CompilerParams(
            dimension_semantics=("parallel",),
            vmem_limit_bytes=vmem_bytes,
        ),
    )(*args)

    out = out[..., :couts[-1]]                     # drop zero channel padding
    return jnp.transpose(out, (0, 2, 1))           # back to (N, C, L)


# ---------------------------------------------------------------------------
# Parameter construction (weight-norm folding)
# ---------------------------------------------------------------------------
def _fold_weight_norm(v, g):
    """PyTorch weight_norm for Conv1d (dim=0): w = g * v / ||v||, norm over (Cin, K)."""
    norm = jnp.sqrt(jnp.sum(v * v, axis=(1, 2)))
    return v * (g / norm)[:, None, None]


def init_tcn_params(key, num_inputs, num_channels, kernel_size):
    """Folded, kernel-layout (K, Cin, Cout) weights for every TemporalBlock."""
    params = []
    in_ch = num_inputs
    for out_ch in num_channels:
        key, k0, k1, k2, k3, k4, k5, k6, k7 = jax.random.split(key, 9)
        v1 = 0.01 * jax.random.normal(k0, (out_ch, in_ch, kernel_size), jnp.float32)
        g1 = 0.5 + jax.random.uniform(k1, (out_ch,), jnp.float32)
        b1 = 0.1 * jax.random.normal(k2, (out_ch,), jnp.float32)
        v2 = 0.01 * jax.random.normal(k3, (out_ch, out_ch, kernel_size), jnp.float32)
        g2 = 0.5 + jax.random.uniform(k4, (out_ch,), jnp.float32)
        b2 = 0.1 * jax.random.normal(k5, (out_ch,), jnp.float32)
        layer = {
            "w1": jnp.transpose(_fold_weight_norm(v1, g1), (2, 1, 0)),  # (K, Cin, Cout)
            "b1": b1,
            "w2": jnp.transpose(_fold_weight_norm(v2, g2), (2, 1, 0)),
            "b2": b2,
        }
        if in_ch != out_ch:  # plain (non-weight-normed) 1x1 downsample conv
            wd = 0.01 * jax.random.normal(k6, (out_ch, in_ch, 1), jnp.float32)
            bd = 0.1 * jax.random.normal(k7, (out_ch,), jnp.float32)
            layer["wd"] = jnp.transpose(wd[:, :, 0])                    # (Cin, Cout)
            layer["bd"] = bd
        params.append(layer)
        in_ch = out_ch
    return params


# ---------------------------------------------------------------------------
# Pure-JAX reference (matches the kernel's bf16-feed / f32-accumulate numerics)
# ---------------------------------------------------------------------------
def tcn_reference(x_ncl, params, *, kernel_size=2):
    dn = ("NLC", "LIO", "NLC")
    x = jnp.transpose(x_ncl, (0, 2, 1)).astype(jnp.float32)
    for i, layer in enumerate(params):
        d = 2 ** i
        pad = (kernel_size - 1) * d
        xb = x.astype(jnp.bfloat16)
        out = lax.conv_general_dilated(
            xb, layer["w1"].astype(jnp.bfloat16), (1,), [(pad, 0)],
            rhs_dilation=(d,), dimension_numbers=dn,
            preferred_element_type=jnp.float32) + layer["b1"]
        out = jnp.maximum(out, 0.0)
        out = lax.conv_general_dilated(
            out.astype(jnp.bfloat16), layer["w2"].astype(jnp.bfloat16), (1,), [(pad, 0)],
            rhs_dilation=(d,), dimension_numbers=dn,
            preferred_element_type=jnp.float32) + layer["b2"]
        out = jnp.maximum(out, 0.0)
        if "wd" in layer:
            res = jnp.einsum("nlc,co->nlo", xb, layer["wd"].astype(jnp.bfloat16),
                             preferred_element_type=jnp.float32) + layer["bd"]
        else:
            res = x
        x = jnp.maximum(out + res, 0.0)
    return jnp.transpose(x, (0, 2, 1))


if __name__ == "__main__":
    # TemporalConvNet(num_inputs=4, num_channels=[32, 32], kernel_size=2)
    # Input follows PyTorch Conv1d layout (N, C, L).
    N, C_IN, L = 2, 4, 16
    NUM_CHANNELS = [32, 32]
    KERNEL_SIZE = 2

    root = jax.random.PRNGKey(0)
    xkey, pkey = jax.random.split(root)
    x = jax.random.normal(xkey, (N, C_IN, L), jnp.float32)
    params = init_tcn_params(pkey, C_IN, NUM_CHANNELS, KERNEL_SIZE)

    out = jax.block_until_ready(tcn_forward(x, params, kernel_size=KERNEL_SIZE))

    ref = tcn_reference(x, params, kernel_size=KERNEL_SIZE)
    max_err = float(jnp.max(jnp.abs(out - ref)))
    # bf16 MXU feeds with f32 accumulation in both kernel and reference — tolerance
    # covers residual reduction-order differences only.
    if not jnp.allclose(out, ref, atol=2e-2, rtol=2e-2):
        raise AssertionError(f"Pallas TCN does not match reference (max abs err {max_err:.3e})")

    print("KERNEL_OK")
</pallas_src>

<mosaic_0001>
module attributes {stable_mosaic.version = 11 : i64} {
  func.func @_tcn_fused_kernel(%arg0: i32, %arg1: memref<2x16x128xbf16, #tpu.memory_space<vmem>>, %arg2: memref<256x128xbf16, #tpu.memory_space<vmem>>, %arg3: memref<1x128xf32, #tpu.memory_space<vmem>>, %arg4: memref<256x128xbf16, #tpu.memory_space<vmem>>, %arg5: memref<1x128xf32, #tpu.memory_space<vmem>>, %arg6: memref<128x128xbf16, #tpu.memory_space<vmem>>, %arg7: memref<1x128xf32, #tpu.memory_space<vmem>>, %arg8: memref<256x128xbf16, #tpu.memory_space<vmem>>, %arg9: memref<1x128xf32, #tpu.memory_space<vmem>>, %arg10: memref<256x128xbf16, #tpu.memory_space<vmem>>, %arg11: memref<1x128xf32, #tpu.memory_space<vmem>>, %arg12: memref<2x16x128xf32, #tpu.memory_space<vmem>>, %arg13: memref<2x32x128xbf16, #tpu.memory_space<vmem>>) attributes {dimension_semantics = [#tpu.dimension_semantics<parallel>], iteration_bounds = array<i64: 1>, scalar_prefetch = 0 : i64, scratch_operands = 1 : i64, tpu.core_type = #tpu.core_type<tc>, window_params = [{transform_indices = @transform_0, window_bounds = array<i64: 2, 16, 128>}, {pipeline_mode = #tpu.pipeline_mode<synchronous>, transform_indices = @transform_1, window_bounds = array<i64: 256, 128>}, {pipeline_mode = #tpu.pipeline_mode<synchronous>, transform_indices = @transform_2, window_bounds = array<i64: 1, 128>}, {pipeline_mode = #tpu.pipeline_mode<synchronous>, transform_indices = @transform_3, window_bounds = array<i64: 256, 128>}, {pipeline_mode = #tpu.pipeline_mode<synchronous>, transform_indices = @transform_4, window_bounds = array<i64: 1, 128>}, {pipeline_mode = #tpu.pipeline_mode<synchronous>, transform_indices = @transform_5, window_bounds = array<i64: 128, 128>}, {pipeline_mode = #tpu.pipeline_mode<synchronous>, transform_indices = @transform_6, window_bounds = array<i64: 1, 128>}, {pipeline_mode = #tpu.pipeline_mode<synchronous>, transform_indices = @transform_7, window_bounds = array<i64: 256, 128>}, {pipeline_mode = #tpu.pipeline_mode<synchronous>, transform_indices = @transform_8, window_bounds = array<i64: 1, 128>}, {pipeline_mode = #tpu.pipeline_mode<synchronous>, transform_indices = @transform_9, window_bounds = array<i64: 256, 128>}, {pipeline_mode = #tpu.pipeline_mode<synchronous>, transform_indices = @transform_10, window_bounds = array<i64: 1, 128>}, {transform_indices = @transform_11, window_bounds = array<i64: 2, 16, 128>}]} {
    %cst = arith.constant 0.000000e+00 : bf16
    %0 = vector.broadcast %cst : bf16 to vector<2x16x128xbf16>
    %c0 = arith.constant 0 : index
    %c0_0 = arith.constant 0 : index
    %c0_1 = arith.constant 0 : index
    %1 = vector.load %arg13[%c0, %c0_0, %c0_1] : memref<2x32x128xbf16, #tpu.memory_space<vmem>>, vector<2x16x128xbf16>
    tpu.vector_store %arg13[%c0, %c0_0, %c0_1], %0 {strides = array<i32>} : memref<2x32x128xbf16, #tpu.memory_space<vmem>>, vector<2x16x128xbf16>,
    %c0_2 = arith.constant 0 : index
    %c0_3 = arith.constant 0 : index
    %c0_4 = arith.constant 0 : index
    %2 = vector.load %arg1[%c0_2, %c0_3, %c0_4] : memref<2x16x128xbf16, #tpu.memory_space<vmem>>, vector<2x16x128xbf16>
    %3 = arith.extf %2 : vector<2x16x128xbf16> to vector<2x16x128xf32>
    %4 = arith.truncf %3 : vector<2x16x128xf32> to vector<2x16x128xbf16>
    %c0_5 = arith.constant 0 : index
    %c16 = arith.constant 16 : index
    %c0_6 = arith.constant 0 : index
    %5 = vector.load %arg13[%c0_5, %c16, %c0_6] : memref<2x32x128xbf16, #tpu.memory_space<vmem>>, vector<2x16x128xbf16>
    tpu.vector_store %arg13[%c0_5, %c16, %c0_6], %4 {strides = array<i32>} : memref<2x32x128xbf16, #tpu.memory_space<vmem>>, vector<2x16x128xbf16>,
    %c0_7 = arith.constant 0 : index
    %c15 = arith.constant 15 : index
    %c0_8 = arith.constant 0 : index
    %6 = vector.load %arg13[%c0_7, %c15, %c0_8] : memref<2x32x128xbf16, #tpu.memory_space<vmem>>, vector<2x16x128xbf16>
    %7 = tpu.concatenate %6, %4 in 2 : vector<2x16x128xbf16>, vector<2x16x128xbf16> -> vector<2x16x256xbf16>
    %8 = vector.shape_cast %7 : vector<2x16x256xbf16> to vector<32x256xbf16>
    %c0_9 = arith.constant 0 : index
    %c0_10 = arith.constant 0 : index
    %9 = vector.load %arg2[%c0_9, %c0_10] : memref<256x128xbf16, #tpu.memory_space<vmem>>, vector<256x128xbf16>
    %cst_11 = arith.constant dense<0.000000e+00> : vector<32x128xf32>
    %10 = tpu.matmul %8, %9, %cst_11 {dimension_numbers = #tpu.dot_dimension_numbers<[1], [0], [0], [1], [0, 0, 1, 1], [], []>} : vector<32x256xbf16>, vector<256x128xbf16>, vector<32x128xf32> -> vector<32x128xf32>
    %c0_12 = arith.constant 0 : index
    %c0_13 = arith.constant 0 : index
    %11 = vector.load %arg3[%c0_12, %c0_13] : memref<1x128xf32, #tpu.memory_space<vmem>>, vector<1x128xf32>
    %12 = vector.broadcast %11 : vector<1x128xf32> to vector<32x128xf32>
    %13 = arith.addf %10, %12 : vector<32x128xf32>
    %cst_14 = arith.constant 0.000000e+00 : f32
    %14 = vector.broadcast %cst_14 : f32 to vector<32x128xf32>
    %15 = arith.maximumf %13, %14 : vector<32x128xf32>
    %16 = vector.shape_cast %15 : vector<32x128xf32> to vector<2x16x128xf32>
    %17 = arith.truncf %16 : vector<2x16x128xf32> to vector<2x16x128xbf16>
    %c0_15 = arith.constant 0 : index
    %c16_16 = arith.constant 16 : index
    %c0_17 = arith.constant 0 : index
    %18 = vector.load %arg13[%c0_15, %c16_16, %c0_17] : memref<2x32x128xbf16, #tpu.memory_space<vmem>>, vector<2x16x128xbf16>
    tpu.vector_store %arg13[%c0_15, %c16_16, %c0_17], %17 {strides = array<i32>} : memref<2x32x128xbf16, #tpu.memory_space<vmem>>, vector<2x16x128xbf16>,
    %c0_18 = arith.constant 0 : index
    %c15_19 = arith.constant 15 : index
    %c0_20 = arith.constant 0 : index
    %19 = vector.load %arg13[%c0_18, %c15_19, %c0_20] : memref<2x32x128xbf16, #tpu.memory_space<vmem>>, vector<2x16x128xbf16>
    %20 = tpu.concatenate %19, %17 in 2 : vector<2x16x128xbf16>, vector<2x16x128xbf16> -> vector<2x16x256xbf16>
    %21 = vector.shape_cast %20 : vector<2x16x256xbf16> to vector<32x256xbf16>
    %c0_21 = arith.constant 0 : index
    %c0_22 = arith.constant 0 : index
    %22 = vector.load %arg4[%c0_21, %c0_22] : memref<256x128xbf16, #tpu.memory_space<vmem>>, vector<256x128xbf16>
    %cst_23 = arith.constant dense<0.000000e+00> : vector<32x128xf32>
    %23 = tpu.matmul %21, %22, %cst_23 {dimension_numbers = #tpu.dot_dimension_numbers<[1], [0], [0], [1], [0, 0, 1, 1], [], []>} : vector<32x256xbf16>, vector<256x128xbf16>, vector<32x128xf32> -> vector<32x128xf32>
    %c0_24 = arith.constant 0 : index
    %c0_25 = arith.constant 0 : index
    %24 = vector.load %arg5[%c0_24, %c0_25] : memref<1x128xf32, #tpu.memory_space<vmem>>, vector<1x128xf32>
    %25 = vector.broadcast %24 : vector<1x128xf32> to vector<32x128xf32>
    %26 = arith.addf %23, %25 : vector<32x128xf32>
    %cst_26 = arith.constant 0.000000e+00 : f32
    %27 = vector.broadcast %cst_26 : f32 to vector<32x128xf32>
    %28 = arith.maximumf %26, %27 : vector<32x128xf32>
    %29 = vector.shape_cast %28 : vector<32x128xf32> to vector<2x16x128xf32>
    %30 = vector.shape_cast %4 : vector<2x16x128xbf16> to vector<32x128xbf16>
    %c0_27 = arith.constant 0 : index
    %c0_28 = arith.constant 0 : index
    %31 = vector.load %arg6[%c0_27, %c0_28] : memref<128x128xbf16, #tpu.memory_space<vmem>>, vector<128x128xbf16>
    %cst_29 = arith.constant dense<0.000000e+00> : vector<32x128xf32>
    %32 = tpu.matmul %30, %31, %cst_29 {dimension_numbers = #tpu.dot_dimension_numbers<[1], [0], [0], [1], [0, 0, 1, 1], [], []>} : vector<32x128xbf16>, vector<128x128xbf16>, vector<32x128xf32> -> vector<32x128xf32>
    %c0_30 = arith.constant 0 : index
    %c0_31 = arith.constant 0 : index
    %33 = vector.load %arg7[%c0_30, %c0_31] : memref<1x128xf32, #tpu.memory_space<vmem>>, vector<1x128xf32>
    %34 = vector.broadcast %33 : vector<1x128xf32> to vector<32x128xf32>
    %35 = arith.addf %32, %34 : vector<32x128xf32>
    %36 = vector.shape_cast %35 : vector<32x128xf32> to vector<2x16x128xf32>
    %37 = arith.addf %29, %36 : vector<2x16x128xf32>
    %cst_32 = arith.constant 0.000000e+00 : f32
    %38 = vector.broadcast %cst_32 : f32 to vector<2x16x128xf32>
    %39 = arith.maximumf %37, %38 : vector<2x16x128xf32>
    %40 = arith.truncf %39 : vector<2x16x128xf32> to vector<2x16x128xbf16>
    %c0_33 = arith.constant 0 : index
    %c16_34 = arith.constant 16 : index
    %c0_35 = arith.constant 0 : index
    %41 = vector.load %arg13[%c0_33, %c16_34, %c0_35] : memref<2x32x128xbf16, #tpu.memory_space<vmem>>, vector<2x16x128xbf16>
    tpu.vector_store %arg13[%c0_33, %c16_34, %c0_35], %40 {strides = array<i32>} : memref<2x32x128xbf16, #tpu.memory_space<vmem>>, vector<2x16x128xbf16>,
    %c0_36 = arith.constant 0 : index
    %c14 = arith.constant 14 : index
    %c0_37 = arith.constant 0 : index
    %42 = vector.load %arg13[%c0_36, %c14, %c0_37] : memref<2x32x128xbf16, #tpu.memory_space<vmem>>, vector<2x16x128xbf16>
    %43 = tpu.concatenate %42, %40 in 2 : vector<2x16x128xbf16>, vector<2x16x128xbf16> -> vector<2x16x256xbf16>
    %44 = vector.shape_cast %43 : vector<2x16x256xbf16> to vector<32x256xbf16>
    %c0_38 = arith.constant 0 : index
    %c0_39 = arith.constant 0 : index
    %45 = vector.load %arg8[%c0_38, %c0_39] : memref<256x128xbf16, #tpu.memory_space<vmem>>, vector<256x128xbf16>
    %cst_40 = arith.constant dense<0.000000e+00> : vector<32x128xf32>
    %46 = tpu.matmul %44, %45, %cst_40 {dimension_numbers = #tpu.dot_dimension_numbers<[1], [0], [0], [1], [0, 0, 1, 1], [], []>} : vector<32x256xbf16>, vector<256x128xbf16>, vector<32x128xf32> -> vector<32x128xf32>
    %c0_41 = arith.constant 0 : index
    %c0_42 = arith.constant 0 : index
    %47 = vector.load %arg9[%c0_41, %c0_42] : memref<1x128xf32, #tpu.memory_space<vmem>>, vector<1x128xf32>
    %48 = vector.broadcast %47 : vector<1x128xf32> to vector<32x128xf32>
    %49 = arith.addf %46, %48 : vector<32x128xf32>
    %cst_43 = arith.constant 0.000000e+00 : f32
    %50 = vector.broadcast %cst_43 : f32 to vector<32x128xf32>
    %51 = arith.maximumf %49, %50 : vector<32x128xf32>
    %52 = vector.shape_cast %51 : vector<32x128xf32> to vector<2x16x128xf32>
    %53 = arith.truncf %52 : vector<2x16x128xf32> to vector<2x16x128xbf16>
    %c0_44 = arith.constant 0 : index
    %c16_45 = arith.constant 16 : index
    %c0_46 = arith.constant 0 : index
    %54 = vector.load %arg13[%c0_44, %c16_45, %c0_46] : memref<2x32x128xbf16, #tpu.memory_space<vmem>>, vector<2x16x128xbf16>
    tpu.vector_store %arg13[%c0_44, %c16_45, %c0_46], %53 {strides = array<i32>} : memref<2x32x128xbf16, #tpu.memory_space<vmem>>, vector<2x16x128xbf16>,
    %c0_47 = arith.constant 0 : index
    %c14_48 = arith.constant 14 : index
    %c0_49 = arith.constant 0 : index
    %55 = vector.load %arg13[%c0_47, %c14_48, %c0_49] : memref<2x32x128xbf16, #tpu.memory_space<vmem>>, vector<2x16x128xbf16>
    %56 = tpu.concatenate %55, %53 in 2 : vector<2x16x128xbf16>, vector<2x16x128xbf16> -> vector<2x16x256xbf16>
    %57 = vector.shape_cast %56 : vector<2x16x256xbf16> to vector<32x256xbf16>
    %c0_50 = arith.constant 0 : index
    %c0_51 = arith.constant 0 : index
    %58 = vector.load %arg10[%c0_50, %c0_51] : memref<256x128xbf16, #tpu.memory_space<vmem>>, vector<256x128xbf16>
    %cst_52 = arith.constant dense<0.000000e+00> : vector<32x128xf32>
    %59 = tpu.matmul %57, %58, %cst_52 {dimension_numbers = #tpu.dot_dimension_numbers<[1], [0], [0], [1], [0, 0, 1, 1], [], []>} : vector<32x256xbf16>, vector<256x128xbf16>, vector<32x128xf32> -> vector<32x128xf32>
    %c0_53 = arith.constant 0 : index
    %c0_54 = arith.constant 0 : index
    %60 = vector.load %arg11[%c0_53, %c0_54] : memref<1x128xf32, #tpu.memory_space<vmem>>, vector<1x128xf32>
    %61 = vector.broadcast %60 : vector<1x128xf32> to vector<32x128xf32>
    %62 = arith.addf %59, %61 : vector<32x128xf32>
    %cst_55 = arith.constant 0.000000e+00 : f32
    %63 = vector.broadcast %cst_55 : f32 to vector<32x128xf32>
    %64 = arith.maximumf %62, %63 : vector<32x128xf32>
    %65 = vector.shape_cast %64 : vector<32x128xf32> to vector<2x16x128xf32>
    %66 = arith.addf %65, %39 : vector<2x16x128xf32>
    %cst_56 = arith.constant 0.000000e+00 : f32
    %67 = vector.broadcast %cst_56 : f32 to vector<2x16x128xf32>
    %68 = arith.maximumf %66, %67 : vector<2x16x128xf32>
    %c0_57 = arith.constant 0 : index
    %c0_58 = arith.constant 0 : index
    %c0_59 = arith.constant 0 : index
    %69 = vector.load %arg12[%c0_57, %c0_58, %c0_59] : memref<2x16x128xf32, #tpu.memory_space<vmem>>, vector<2x16x128xf32>
    tpu.vector_store %arg12[%c0_57, %c0_58, %c0_59], %68 {strides = array<i32>} : memref<2x16x128xf32, #tpu.memory_space<vmem>>, vector<2x16x128xf32>,
    return
  }
  func.func @transform_0(%arg0: i32) -> (i32, i32, i32) {
    %c0_i32 = arith.constant 0 : i32
    %c0_i32_0 = arith.constant 0 : i32
    %c0_i32_1 = arith.constant 0 : i32
    return %arg0, %c0_i32, %c0_i32_0 : i32, i32, i32
  }
  func.func @transform_1(%arg0: i32) -> (i32, i32) {
    %c0_i32 = arith.constant 0 : i32
    %c0_i32_0 = arith.constant 0 : i32
    %c0_i32_1 = arith.constant 0 : i32
    return %c0_i32, %c0_i32_0 : i32, i32
  }
  func.func @transform_2(%arg0: i32) -> (i32, i32) {
    %c0_i32 = arith.constant 0 : i32
    %c0_i32_0 = arith.constant 0 : i32
    %c0_i32_1 = arith.constant 0 : i32
    return %c0_i32, %c0_i32_0 : i32, i32
  }
  func.func @transform_3(%arg0: i32) -> (i32, i32) {
    %c0_i32 = arith.constant 0 : i32
    %c0_i32_0 = arith.constant 0 : i32
    %c0_i32_1 = arith.constant 0 : i32
    return %c0_i32, %c0_i32_0 : i32, i32
  }
  func.func @transform_4(%arg0: i32) -> (i32, i32) {
    %c0_i32 = arith.constant 0 : i32
    %c0_i32_0 = arith.constant 0 : i32
    %c0_i32_1 = arith.constant 0 : i32
    return %c0_i32, %c0_i32_0 : i32, i32
  }
  func.func @transform_5(%arg0: i32) -> (i32, i32) {
    %c0_i32 = arith.constant 0 : i32
    %c0_i32_0 = arith.constant 0 : i32
    %c0_i32_1 = arith.constant 0 : i32
    return %c0_i32, %c0_i32_0 : i32, i32
  }
  func.func @transform_6(%arg0: i32) -> (i32, i32) {
    %c0_i32 = arith.constant 0 : i32
    %c0_i32_0 = arith.constant 0 : i32
    %c0_i32_1 = arith.constant 0 : i32
    return %c0_i32, %c0_i32_0 : i32, i32
  }
  func.func @transform_7(%arg0: i32) -> (i32, i32) {
    %c0_i32 = arith.constant 0 : i32
    %c0_i32_0 = arith.constant 0 : i32
    %c0_i32_1 = arith.constant 0 : i32
    return %c0_i32, %c0_i32_0 : i32, i32
  }
  func.func @transform_8(%arg0: i32) -> (i32, i32) {
    %c0_i32 = arith.constant 0 : i32
    %c0_i32_0 = arith.constant 0 : i32
    %c0_i32_1 = arith.constant 0 : i32
    return %c0_i32, %c0_i32_0 : i32, i32
  }
  func.func @transform_9(%arg0: i32) -> (i32, i32) {
    %c0_i32 = arith.constant 0 : i32
    %c0_i32_0 = arith.constant 0 : i32
    %c0_i32_1 = arith.constant 0 : i32
    return %c0_i32, %c0_i32_0 : i32, i32
  }
  func.func @transform_10(%arg0: i32) -> (i32, i32) {
    %c0_i32 = arith.constant 0 : i32
    %c0_i32_0 = arith.constant 0 : i32
    %c0_i32_1 = arith.constant 0 : i32
    return %c0_i32, %c0_i32_0 : i32, i32
  }
  func.func @transform_11(%arg0: i32) -> (i32, i32, i32) {
    %c0_i32 = arith.constant 0 : i32
    %c0_i32_0 = arith.constant 0 : i32
    %c0_i32_1 = arith.constant 0 : i32
    return %arg0, %c0_i32, %c0_i32_0 : i32, i32, i32
  }
}

</mosaic_0001>

<bundles_post_ra>
// kernel: tpu_custom_call.1
= control target key start
LH: loop header
LB: loop body
LE: loop exit
PB: predicated region body
PF: predicated region fallthrough
CT: control target
= control target key end

     0   :  { %16 = vsyncpa [#allocation4], 0  ;;  %s2012_s0 = inlined_call_operand.hbm [shape: bf16[2,16,128], index: 0, kind: input, shape index: {}]   ;;  %s2013_s1 = inlined_call_operand.hbm [shape: bf16[256,128], index: 1, kind: input, shape index: {}]   ;;  %s2014_s2 = inlined_call_operand.vmem [shape: f32[1,128], index: 2, kind: input, shape index: {}]   ;;  %s2015_s3 = inlined_call_operand.hbm [shape: bf16[256,128], index: 3, kind: input, shape index: {}]   ;;  %s2016_s4 = inlined_call_operand.vmem [shape: f32[1,128], index: 4, kind: input, shape index: {}]   ;;  %s2017_s5 = inlined_call_operand.hbm [shape: bf16[128,128], index: 5, kind: input, shape index: {}]   ;;  %s2018_s6 = inlined_call_operand.vmem [shape: f32[1,128], index: 6, kind: input, shape index: {}]   ;;  %s2019_s7 = inlined_call_operand.hbm [shape: bf16[256,128], index: 7, kind: input, shape index: {}]   ;;  %s2020_s8 = inlined_call_operand.vmem [shape: f32[1,128], index: 8, kind: input, shape index: {}]   ;;  %s2021_s9 = inlined_call_operand.hbm [shape: bf16[256,128], index: 9, kind: input, shape index: {}]   ;;  %s2022_s10 = inlined_call_operand.vmem [shape: f32[1,128], index: 10, kind: input, shape index: {}]   ;;  %s2023_s11 = inlined_call_operand.hbm [shape: f32[2,16,128], index: 11, kind: output, shape index: {}]  }
   0x1   :  { %17 = vsyncpa [#allocation7], 0 }
   0x2   :  { %18 = vsyncpa [#allocation10], 0 }
   0x3   :  { %19 = vsyncpa [#allocation13], 0 }
   0x4   :  { %20 = vsyncpa [#allocation5], 0  ;;  %s1751_s17 = smov [#allocation6]   ;;  %s1752_s19 = smov [#allocation9]  }
   0x5   :  { %s38_s18 = sshll.u32 %s1751_s17, 4  ;;  %s66_s20 = sshll.u32 %s1752_s19, 4  ;;  %s39_s18 = int_to_ptr.vmem [resolvable:$true] %s38_s18  ;;  %s1823_s20 = int_to_ptr.vmem [resolvable:$true] %s66_s20 }
   0x6   :  { %s1587_s23 = scalar_lea.hbm %s2013_s1, 2048 }
   0x7   :  { %p1588_p0 = scmp.ne.s32.totalorder %s2013_s1, %s1587_s23  ;;  %p1591_p1 = scmp.lt.u32.totalorder %s1587_s23, %s2013_s1 }
   0x9   :  { %p1593_p2 = pnand %p1591_p1, %p1588_p0 }
   0xb   :  { %1596 = shalt.err (!%p1593_p2)
}
   0xc   :  { %s1597_s28 = scalar_lea.vmem %s39_s18, 2048  ;;  %p1602_p4 = scmp.lt.s32.totalorder %s39_s18, %s39_s18 }
   0xd   :  { %p1598_p3 = scmp.ne.s32.totalorder %s39_s18, %s1597_s28  ;;  %p1603_p5 = scmp.lt.s32.totalorder %s1597_s28, %s1597_s28 }
   0xf   :  { %p1604_p6 = por %p1603_p5, %p1602_p4 }
  0x11   :  { %p1605_p7 = pnand %p1604_p6, %p1598_p3 }
  0x13   :  { %1608 = shalt.err (!%p1605_p7)
}
  0x14   :  { %s1753_s29 = smov 64   ;;  %s1754_s30 = smov 4  }
  0x15   :  { %44 = dma.hbm_to_vmem [thread:$0]  %s2013_s1, 2048, %s39_s18, [#allocation7], %s1753_s29, %s1753_s29, %s1754_s30  }
  0x16   :  { %s1609_s16 = scalar_lea.hbm %s2017_s5, 1024 }
  0x17   :  { %p1610_p8 = scmp.ne.s32.totalorder %s2017_s5, %s1609_s16  ;;  %p1613_p9 = scmp.lt.u32.totalorder %s1609_s16, %s2017_s5 }
  0x19   :  { %p1615_p10 = pnand %p1613_p9, %p1610_p8 }
  0x1b   :  { %1618 = shalt.err (!%p1615_p10)
}
  0x1c   :  { %s1619_s23 = scalar_lea.vmem %s1823_s20, 1024  ;;  %p1624_p12 = scmp.lt.s32.totalorder %s1823_s20, %s1823_s20 }
  0x1d   :  { %p1620_p11 = scmp.ne.s32.totalorder %s1823_s20, %s1619_s23  ;;  %p1625_p13 = scmp.lt.s32.totalorder %s1619_s23, %s1619_s23 }
  0x1f   :  { %p1626_p0 = por %p1625_p13, %p1624_p12 }
  0x21   :  { %p1627_p1 = pnand %p1626_p0, %p1620_p11 }
  0x23   :  { %1630 = shalt.err (!%p1627_p1)
}
  0x24   :  { %72 = dma.hbm_to_vmem [thread:$0]  %s2017_s5, 1024, %s1823_s20, [#allocation10], %s1753_s29, %s1753_s29, %s1754_s30  }
  0x25   :  { %s1755_s24 = smov [#allocation3]   ;;  %s1756_s26 = smov [#allocation8]  }
  0x26   :  { %s26_s25 = sshll.u32 %s1755_s24, 4  ;;  %s52_s27 = sshll.u32 %s1756_s26, 4  ;;  %s27_s25 = int_to_ptr.vmem [resolvable:$true] %s26_s25  ;;  %s1860_s27 = int_to_ptr.vmem [resolvable:$true] %s52_s27 }
  0x27   :  { %s1631_s13 = scalar_lea.hbm %s2012_s0, 256 }
  0x28   :  { %p1632_p2 = scmp.ne.s32.totalorder %s2012_s0, %s1631_s13  ;;  %p1635_p3 = scmp.lt.u32.totalorder %s1631_s13, %s2012_s0 }
  0x2a   :  { %p1637_p4 = pnand %p1635_p3, %p1632_p2 }
  0x2c   :  { %1640 = shalt.err (!%p1637_p4)
}
  0x2d   :  { %s1641_s5 = scalar_lea.vmem %s27_s25, 256  ;;  %p1646_p6 = scmp.lt.s32.totalorder %s27_s25, %s27_s25 }
  0x2e   :  { %p1642_p5 = scmp.ne.s32.totalorder %s27_s25, %s1641_s5  ;;  %p1647_p7 = scmp.lt.s32.totalorder %s1641_s5, %s1641_s5 }
  0x30   :  { %p1648_p8 = por %p1647_p7, %p1646_p6 }
  0x32   :  { %p1649_p9 = pnand %p1648_p8, %p1642_p5 }
  0x34   :  { %1652 = shalt.err (!%p1649_p9)
}
  0x35   :  { %32 = dma.hbm_to_vmem [thread:$0]  %s2012_s0, 256, %s27_s25, [#allocation4], %s1753_s29, %s1753_s29, %s1754_s30  }
  0x36   :  { %s1653_s23 = scalar_lea.hbm %s2015_s3, 2048 }
  0x37   :  { %p1654_p10 = scmp.ne.s32.totalorder %s2015_s3, %s1653_s23  ;;  %p1657_p11 = scmp.lt.u32.totalorder %s1653_s23, %s2015_s3 }
  0x39   :  { %p1659_p12 = pnand %p1657_p11, %p1654_p10 }
  0x3b   :  { %1662 = shalt.err (!%p1659_p12)
}
  0x3c   :  { %s1663_s28 = scalar_lea.vmem %s1860_s27, 2048  ;;  %p1668_p0 = scmp.lt.s32.totalorder %s1860_s27, %s1860_s27 }
  0x3d   :  { %p1664_p13 = scmp.ne.s32.totalorder %s1860_s27, %s1663_s28  ;;  %p1669_p1 = scmp.lt.s32.totalorder %s1663_s28, %s1663_s28 }
  0x3f   :  { %p1670_p2 = por %p1669_p1, %p1668_p0 }
  0x41   :  { %p1671_p3 = pnand %p1670_p2, %p1664_p13 }
  0x43   :  { %1674 = shalt.err (!%p1671_p3)
}
  0x44   :  { %58 = dma.hbm_to_vmem [thread:$0]  %s2015_s3, 2048, %s1860_s27, [#allocation7], %s1753_s29, %s1753_s29, %s1754_s30  }
  0x45   :  { %s1757_s12 = smov [#allocation11]   ;;  %s1758_s14 = smov [#allocation12]  }
  0x46   :  { %s80_s13 = sshll.u32 %s1757_s12, 4  ;;  %s94_s15 = sshll.u32 %s1758_s14, 4  ;;  %s81_s13 = int_to_ptr.vmem [resolvable:$true] %s80_s13  ;;  %s1897_s15 = int_to_ptr.vmem [resolvable:$true] %s94_s15 }
  0x47   :  { %s1675_s5 = scalar_lea.hbm %s2019_s7, 2048 }
  0x48   :  { %p1676_p4 = scmp.ne.s32.totalorder %s2019_s7, %s1675_s5  ;;  %p1679_p5 = scmp.lt.u32.totalorder %s1675_s5, %s2019_s7 }
  0x4a   :  { %p1681_p6 = pnand %p1679_p5, %p1676_p4 }
  0x4c   :  { %1684 = shalt.err (!%p1681_p6)
}
  0x4d   :  { %s1685_s3 = scalar_lea.vmem %s81_s13, 2048  ;;  %p1690_p8 = scmp.lt.s32.totalorder %s81_s13, %s81_s13 }
  0x4e   :  { %p1686_p7 = scmp.ne.s32.totalorder %s81_s13, %s1685_s3  ;;  %p1691_p9 = scmp.lt.s32.totalorder %s1685_s3, %s1685_s3 }
  0x50   :  { %p1692_p10 = por %p1691_p9, %p1690_p8 }
  0x52   :  { %p1693_p11 = pnand %p1692_p10, %p1686_p7 }
  0x54   :  { %1696 = shalt.err (!%p1693_p11)
}
  0x55   :  { %86 = dma.hbm_to_vmem [thread:$0]  %s2019_s7, 2048, %s81_s13, [#allocation10], %s1753_s29, %s1753_s29, %s1754_s30  }
  0x56   :  { %s1697_s24 = scalar_lea.hbm %s2021_s9, 2048 }
  0x57   :  { %p1698_p12 = scmp.ne.s32.totalorder %s2021_s9, %s1697_s24  ;;  %p1701_p13 = scmp.lt.u32.totalorder %s1697_s24, %s2021_s9 }
  0x59   :  { %p1703_p0 = pnand %p1701_p13, %p1698_p12 }
  0x5b   :  { %1706 = shalt.err (!%p1703_p0)
}
  0x5c   :  { %s1707_s12 = scalar_lea.vmem %s1897_s15, 2048  ;;  %p1712_p2 = scmp.lt.s32.totalorder %s1897_s15, %s1897_s15 }
  0x5d   :  { %p1708_p1 = scmp.ne.s32.totalorder %s1897_s15, %s1707_s12  ;;  %p1713_p3 = scmp.lt.s32.totalorder %s1707_s12, %s1707_s12 }
  0x5f   :  { %p1714_p4 = por %p1713_p3, %p1712_p2 }
  0x61   :  { %p1715_p5 = pnand %p1714_p4, %p1708_p1 }
  0x63   :  { %1718 = shalt.err (!%p1715_p5)
}
  0x64   :  { %100 = dma.hbm_to_vmem [thread:$0]  %s2021_s9, 2048, %s1897_s15, [#allocation13], %s1753_s29, %s1753_s29, %s1754_s30  }
  0x65   :  { %1741 = dma.done.wait [#allocation4], 256  }
  0x66   :  { %1742 = vsyncadd [#allocation4], 4294967040 }
  0x67   :  { %1743 = dma.done.wait [#allocation7], 4096  }
  0x68   :  { %1744 = vsyncadd [#allocation7], 4294963200 }
  0x69   :  { %1745 = dma.done.wait [#allocation10], 3072  }
  0x6a   :  { %1746 = vsyncadd [#allocation10], 4294964224 }
  0x6b   :  { %1747 = dma.done.wait [#allocation13], 2048  }
  0x6c   :  { %1748 = vsyncadd [#allocation13], 4294965248  ;;  %v1759_v0 = vmov 0   ;;  %v1513_v1 = vld [vmem:[#allocation6 + $0x40] sm:$0xff]   ;;  %v1515_v3 = vld [vmem:[#allocation6 + $0x48] sm:$0xff]   ;;  %vm807_vm1 = vcmask 1040384  }
  0x6d   :  { %122 = vst [vmem:[#allocation2] sm:$0xff] %v1759_v0  ;;  %123 = vst [vmem:[#allocation2 + $0x10] sm:$0xff] %v1759_v0  ;;  %v1514_v2 = vld [vmem:[#allocation6] sm:$0xff]   ;;  %1343 = vmatprep.subr.bf16.mxu0 %v1513_v1  ;;  %v1516_v4 = vld [vmem:[#allocation6 + $0x8] sm:$0xff]   ;;  %vm160_vm0 = vsmask.f32 256 }
  0x6e   :  { %1344 = vmatpush3.bf16.msra.mxu0 %v1514_v2  ;;  %v1517_v5 = vld [vmem:[#allocation6 + $0x50] sm:$0xff]   ;;  %v1519_v7 = vld [vmem:[#allocation6 + $0x58] sm:$0xff]   ;;  %v1521_v9 = vld [vmem:[#allocation6 + $0x60] sm:$0xff]  }
  0x6f   :  { %1345 = vmatprep.subr.bf16.mxu0 %v1515_v3  ;;  %v1518_v6 = vld [vmem:[#allocation6 + $0x10] sm:$0xff]   ;;  %v1520_v8 = vld [vmem:[#allocation6 + $0x18] sm:$0xff]   ;;  %v1522_v10 = vld [vmem:[#allocation6 + $0x20] sm:$0xff]  }
  0x70   :  { %v1523_v11 = vld [vmem:[#allocation6 + $0x68] sm:$0xff]   ;;  %v1529_v12 = vld [vmem:[#allocation3] sm:$0xff]   ;;  %v1934_v17 = vld [vmem:[#allocation3 + $0x8] sm:$0xff]  }
  0x71   :  { %v1524_v14 = vld [vmem:[#allocation6 + $0x28] sm:$0xff]   ;;  %v147_v15 = vshll.u32 %v1529_v12, 16  ;;  %v150_v16 = vshrl.u32 %v1529_v12, 16  ;;  %v1531_v19 = vld [vmem:[#allocation8 + $0x40] sm:$0xff]   ;;  %v1525_v20 = vld [vmem:[#allocation6 + $0x70] sm:$0xff]   ;;  %v154_v23 = vshll.u32 %v1934_v17, 16 }
  0x72   :  { %1346 = vmatpush3.bf16.msra.mxu0 %v1516_v4  ;;  %v1526_v24 = vld [vmem:[#allocation6 + $0x30] sm:$0xff]   ;;  %v157_v25 = vshrl.u32 %v1934_v17, 16  ;;  %1371 = vmatprep.subr.bf16.mxu1 %v1531_v19  ;;  %v1532_v27 = vld [vmem:[#allocation8] sm:$0xff]   ;;  %v1534_v32 = vld [vmem:[#allocation8 + $0x48] sm:$0xff]  }
  0x73   :  { %1347 = vmatprep.subr.bf16.mxu0 %v1517_v5  ;;  %v149_v21 = vrot.slane %v147_v15, 1  ;;  %v156_v30 = vrot.slane %v154_v23, 1  ;;  %v168_v31 = vrot.slane %v150_v16, 7  ;;  %1372 = vmatpush3.bf16.msra.mxu1 %v1532_v27  ;;  %v1527_v33 = vld [vmem:[#allocation6 + $0x78] sm:$0xff]   ;;  %v1533_v47 = vld [vmem:[#allocation9] sm:$0xff]   ;;  %v1535_v57 = vld [vmem:[#allocation8 + $0x8] sm:$0xff]  }
  0x74   :  { %v142_v13 = vld [vmem:[#allocation2] sm:$0x80]  ;;  %v144_v18 = vld [vmem:[#allocation2 + $0x10] sm:$0x80]  ;;  %v1528_v37 = vld [vmem:[#allocation6 + $0x38] sm:$0xff]   ;;  %1373 = vmatprep.subr.bf16.mxu1 %v1534_v32  ;;  %v192_v46 = vrot.slane %v157_v25, 7 }
  0x75   :  { %v162_v22 = vshrl.u32 %v142_v13, 16  ;;  %v186_v26 = vshrl.u32 %v144_v18, 16  ;;  %v152_v28 = vor.u32 %v150_v16, %v149_v21  ;;  %v174_v29 = vshrl.u32 %v149_v21, 16  ;;  %v1536_v58 = vld [vmem:[#allocation9 + $0x8] sm:$0xff]   ;;  %v1537_v59 = vld [vmem:[#allocation8 + $0x50] sm:$0xff]   ;;  %v1540_v62 = vld [vmem:[#allocation8 + $0x58] sm:$0xff]  }
  0x76   :  { %1348 = vmatpush3.bf16.msra.mxu0 %v1518_v6  ;;  %v159_v38 = vor.u32 %v157_v25, %v156_v30  ;;  %v198_v39 = vshrl.u32 %v156_v30, 16  ;;  %v171_v43 = vor.u32 %v168_v31, %v147_v15  ;;  %v195_v55 = vor.u32 %v192_v46, %v154_v23  ;;  %v1538_v60 = vld [vmem:[#allocation8 + $0x10] sm:$0xff]   ;;  %v1541_v63 = vld [vmem:[#allocation8 + $0x18] sm:$0xff]   ;;  %v1543_v1 = vld [vmem:[#allocation8 + $0x60] sm:$0xff]  }
  0x77   :  { %1349 = vmatprep.subr.bf16.mxu0 %v1519_v7  ;;  %v178_v34 = vshrl.u32 %v152_v28, 16  ;;  %v181_v35 = vshll.u32 %v152_v28, 16  ;;  %v164_v36 = vrot.slane %v162_v22, 7  ;;  %v188_v40 = vrot.slane %v186_v26, 7  ;;  %1374 = vmatpush3.bf16.msra.mxu1 %v1535_v57  ;;  %v1539_v61 = vld [vmem:[#allocation9 + $0x10] sm:$0xff]   ;;  %v1542_v0 = vld [vmem:[#allocation9 + $0x18] sm:$0xff]  }
  0x78   :  { %v176_v41 = vrot.slane %v174_v29, 7  ;;  %v202_v44 = vshrl.u32 %v159_v38, 16  ;;  %v205_v45 = vshll.u32 %v159_v38, 16  ;;  %v200_v49 = vrot.slane %v198_v39, 7  ;;  %1375 = vmatprep.subr.bf16.mxu1 %v1537_v59  ;;  %v1544_v2 = vld [vmem:[#allocation8 + $0x20] sm:$0xff]   ;;  %v1546_v4 = vld [vmem:[#allocation8 + $0x68] sm:$0xff]  }
  0x79   :  { %v180_v42 = vrot.slane %v178_v34, 7  ;;  %v172_v52 = vsel %vm160_vm0, %v164_v36, %v171_v43  ;;  %v196_v56 = vsel %vm160_vm0, %v188_v40, %v195_v55  ;;  %v1545_v3 = vld [vmem:[#allocation9 + $0x20] sm:$0xff]   ;;  %v1547_v5 = vld [vmem:[#allocation8 + $0x28] sm:$0xff]   ;;  %v1549_v7 = vld [vmem:[#allocation8 + $0x70] sm:$0xff]  }
  0x7a   :  { %1350 = vmatpush3.bf16.msra.mxu0 %v1520_v8  ;;  %v204_v50 = vrot.slane %v202_v44, 7  ;;  %v1548_v6 = vld [vmem:[#allocation9 + $0x28] sm:$0xff]   ;;  %v1550_v8 = vld [vmem:[#allocation8 + $0x30] sm:$0xff]   ;;  %v1555_v13 = vld [vmem:[#allocation11 + $0x40] sm:$0xff]  }
  0x7b   :  { %1351 = vmatprep.subr.bf16.mxu0 %v1521_v9  ;;  %v183_v48 = vor.u32 %v181_v35, %v180_v42  ;;  %1376 = vmatpush3.bf16.msra.mxu1 %v1538_v60  ;;  %v1551_v9 = vld [vmem:[#allocation9 + $0x30] sm:$0xff]   ;;  %v407_v55 = vld [vmem:[#allocation2 + $0x10] sm:$0x80]  ;;  %v1557_v59 = vld [vmem:[#allocation11 + $0x48] sm:$0xff]  }
  0x7c   :  { %v207_v53 = vor.u32 %v205_v45, %v204_v50  ;;  %1377 = vmatprep.subr.bf16.mxu1 %v1540_v62  ;;  %v1262_v15 = vld [vmem:[%s2014_s2] ss:$0 sm:$0xff] }
  0x7d   :  { %v184_v51 = vsel %vm160_vm0, %v176_v41, %v183_v48 }
  0x7e   :  { %1352 = vmatpush3.bf16.msra.mxu0 %v1522_v10  ;;  %380 = vmatprep.mubr.bf16.mxu0 %v184_v51  ;;  %v208_v54 = vsel %vm160_vm0, %v200_v49, %v207_v53  ;;  %v1552_v10 = vld [vmem:[#allocation8 + $0x78] sm:$0xff]  }
  0x7f   :  { %1353 = vmatprep.subr.bf16.mxu0 %v1523_v11  ;;  %1378 = vmatpush3.bf16.msra.mxu1 %v1541_v63  ;;  %v1553_v11 = vld [vmem:[#allocation8 + $0x38] sm:$0xff]  }
  0x80   :  { %1379 = vmatprep.subr.bf16.mxu1 %v1543_v1 }
  0x82   :  { %1354 = vmatpush3.bf16.msra.mxu0 %v1524_v14 }
  0x83   :  { %1355 = vmatprep.subr.bf16.mxu0 %v1525_v20  ;;  %1380 = vmatpush3.bf16.msra.mxu1 %v1544_v2 }
  0x84   :  { %1381 = vmatprep.subr.bf16.mxu1 %v1546_v4 }
  0x86   :  { %1356 = vmatpush3.bf16.msra.mxu0 %v1526_v24 }
  0x87   :  { %1357 = vmatprep.subr.bf16.mxu0 %v1527_v33  ;;  %1382 = vmatpush3.bf16.msra.mxu1 %v1547_v5 }
  0x88   :  { %1383 = vmatprep.subr.bf16.mxu1 %v1549_v7 }
  0x8a   :  { %1358 = vmatpush3.bf16.msra.mxu0 %v1528_v37  ;;  %v405_v37 = vld [vmem:[#allocation2] sm:$0x80] }
  0x8b   :  { %1465 = vmatprep.subr.bf16.mxu0 %v1533_v47  ;;  %1384 = vmatpush3.bf16.msra.mxu1 %v1550_v8  ;;  %v424_v41 = vshrl.u32 %v405_v37, 16 }
  0x8c   :  { %1385 = vmatprep.subr.bf16.mxu1 %v1552_v10 }
  0x8d   :  { %381 = vmatmul.mubr.bf16.vlgmr.msra.gmra.mrb[0].mxu0 %v172_v52  ;;  %v426_v50 = vrot.slane %v424_v41, 7 }
  0x8e   :  { %388 = vmatprep.mubr.bf16.mxu0 %v208_v54  ;;  %1466 = vmatpush3.bf16.msra.mxu0 %v1533_v47 }
  0x8f   :  { %1467 = vmatprep.subr.bf16.mxu0 %v1536_v58  ;;  %1386 = vmatpush3.bf16.msra.mxu1 %v1553_v11  ;;  %v1559_v11 = vld [vmem:[#allocation11 + $0x50] sm:$0xff]  }
  0x90   :  { %1409 = vmatprep.subr.bf16.mxu1 %v1555_v13  ;;  %v1560_v13 = vld [vmem:[#allocation11 + $0x10] sm:$0xff]  }
  0x92   :  { %1468 = vmatpush3.bf16.msra.mxu0 %v1536_v58 }
  0x93   :  { %1469 = vmatprep.subr.bf16.mxu0 %v1539_v61 }
  0x95   :  { %389 = vmatmul.mubr.bf16.gmra.mrb[4].mxu0 %v196_v56  ;;  %v1556_v56 = vld [vmem:[#allocation11] sm:$0xff]  }
  0x96   :  { %1481 = vmatprep.mubr.bf16.mxu0 %v1529_v12  ;;  %1470 = vmatpush3.bf16.msra.mxu0 %v1539_v61  ;;  %v1554_v12 = vld [vmem:[#allocation9 + $0x38] sm:$0xff]   ;;  %v448_v61 = vshrl.u32 %v407_v55, 16 }
  0x97   :  { %1471 = vmatprep.subr.bf16.mxu0 %v1542_v0 }
  0x9a   :  { %1472 = vmatpush3.bf16.msra.mxu0 %v1542_v0 }
  0x9b   :  { %1473 = vmatprep.subr.bf16.mxu0 %v1545_v3 }
  0x9e   :  { %1474 = vmatpush3.bf16.msra.mxu0 %v1545_v3  ;;  %v450_v3 = vrot.slane %v448_v61, 7 }
  0x9f   :  { %1475 = vmatprep.subr.bf16.mxu0 %v1548_v6 }
  0xa2   :  { %1476 = vmatpush3.bf16.msra.mxu0 %v1548_v6 }
  0xa3   :  { %1477 = vmatprep.subr.bf16.mxu0 %v1551_v9 }
  0xa6   :  { %1478 = vmatpush3.bf16.msra.mxu0 %v1551_v9  ;;  %v1558_v9 = vld [vmem:[#allocation11 + $0x8] sm:$0xff]  }
  0xa7   :  { %1479 = vmatprep.subr.bf16.mxu0 %v1554_v12 }
  0xaa   :  { %1480 = vmatpush3.bf16.msra.mxu0 %v1554_v12 }
  0xad   :  { %1482 = vmatmul.mubr.bf16.vlgmr.msra.gmra.mrb[8].mxu0 %v1934_v17 }
 0x160   :  { %v1359_v14 = vpop.f32.mrb[0].mxu0 }
 0x161   :  { %v1360_v16 = vpop.f32.mrb[1].mxu0 }
 0x162   :  { %v1361_v18 = vadd.f32 %v1360_v16, %v1359_v14  ;;  %v1362_v19 = vpop.f32.mrb[2].mxu0  ;;  %v1561_v16 = vld [vmem:[#allocation11 + $0x58] sm:$0xff]  }
 0x163   :  { %v1363_v20 = vpop.f32.mrb[3].mxu0 }
 0x164   :  { %v383_v21 = vadd.f32 %v1361_v18, %v1262_v15  ;;  %v1364_v22 = vadd.f32 %v1363_v20, %v1362_v19  ;;  %v1562_v18 = vld [vmem:[#allocation11 + $0x18] sm:$0xff]   ;;  %v1563_v19 = vld [vmem:[#allocation11 + $0x60] sm:$0xff]  }
 0x165   :  { %v1564_v20 = vld [vmem:[#allocation11 + $0x20] sm:$0xff]  }
 0x166   :  { %v386_v23 = vadd.f32 %v1364_v22, %v1262_v15  ;;  %v397_v24 = vmax.f32 %v383_v21, 0.0  ;;  %v1565_v21 = vld [vmem:[#allocation11 + $0x68] sm:$0xff]  }
 0x167   :  { %v1566_v22 = vld [vmem:[#allocation11 + $0x28] sm:$0xff]  }
 0x168   :  { %v398_v25 = vmax.f32 %v386_v23, 0.0  ;;  %v1365_v26 = vpop.f32.mrb[4].mxu0  ;;  %v1567_v23 = vld [vmem:[#allocation11 + $0x70] sm:$0xff]  }
 0x169   :  { %v1366_v27 = vpop.f32.mrb[5].mxu0 }
 0x16a   :  { %v401_v28 = vpack.c.bf16 %v398_v25, %v397_v24  ;;  %v1367_v17 = vadd.f32 %v1366_v27, %v1365_v26  ;;  %v1368_v29 = vpop.f32.mrb[6].mxu0  ;;  %v1568_v24 = vld [vmem:[#allocation11 + $0x30] sm:$0xff]   ;;  %v1569_v25 = vld [vmem:[#allocation11 + $0x78] sm:$0xff]   ;;  %v1571_v27 = vld [vmem:[#allocation12 + $0x40] sm:$0xff]  }
 0x16b   :  { %v1369_v30 = vpop.f32.mrb[7].mxu0  ;;  %v1570_v26 = vld [vmem:[#allocation11 + $0x38] sm:$0xff]   ;;  %1437 = vmatprep.subr.bf16.mxu0 %v1571_v27 }
 0x16c   :  { %v391_v31 = vadd.f32 %v1367_v17, %v1262_v15  ;;  %v1370_v32 = vadd.f32 %v1369_v30, %v1368_v29  ;;  %v410_v33 = vshll.u32 %v401_v28, 16  ;;  %v413_v34 = vshrl.u32 %v401_v28, 16  ;;  %v1572_v28 = vld [vmem:[#allocation12] sm:$0xff]   ;;  %v1573_v17 = vld [vmem:[#allocation12 + $0x48] sm:$0xff]   ;;  %v1575_v30 = vld [vmem:[#allocation12 + $0x50] sm:$0xff]  }
 0x16d   :  { %1438 = vmatpush3.bf16.msra.mxu0 %v1572_v28  ;;  %v1574_v29 = vld [vmem:[#allocation12 + $0x8] sm:$0xff]  }
 0x16e   :  { %v394_v35 = vadd.f32 %v1370_v32, %v1262_v15  ;;  %v412_v36 = vrot.slane %v410_v33, 1  ;;  %v399_v38 = vmax.f32 %v391_v31, 0.0  ;;  %v430_v42 = vrot.slane %v413_v34, 7  ;;  %1439 = vmatprep.subr.bf16.mxu0 %v1573_v17  ;;  %v1279_v32 = vld [vmem:[%s2016_s4] ss:$0 sm:$0xff] }
 0x170   :  { %v400_v39 = vmax.f32 %v394_v35, 0.0  ;;  %v415_v40 = vor.u32 %v413_v34, %v412_v36  ;;  %v436_v44 = vshrl.u32 %v412_v36, 16  ;;  %v433_v51 = vor.u32 %v430_v42, %v410_v33  ;;  %v1296_v34 = vld [vmem:[%s2018_s6] ss:$0 sm:$0xff] }
 0x171   :  { %1440 = vmatpush3.bf16.msra.mxu0 %v1574_v29 }
 0x172   :  { %v402_v43 = vpack.c.bf16 %v400_v39, %v399_v38  ;;  %v440_v45 = vshrl.u32 %v415_v40, 16  ;;  %v443_v47 = vshll.u32 %v415_v40, 16  ;;  %v438_v52 = vrot.slane %v436_v44, 7  ;;  %1441 = vmatprep.subr.bf16.mxu0 %v1575_v30 }
 0x173   :  { %v434_v60 = vsel %vm160_vm0, %v426_v50, %v433_v51 }
 0x174   :  { %v442_v46 = vrot.slane %v440_v45, 7  ;;  %v417_v48 = vshll.u32 %v402_v43, 16  ;;  %v420_v49 = vshrl.u32 %v402_v43, 16 }
 0x176   :  { %v445_v53 = vor.u32 %v443_v47, %v442_v46  ;;  %v419_v54 = vrot.slane %v417_v48, 1  ;;  %v454_v62 = vrot.slane %v420_v49, 7 }
 0x178   :  { %v446_v57 = vsel %vm160_vm0, %v438_v52, %v445_v53  ;;  %v422_v58 = vor.u32 %v420_v49, %v419_v54  ;;  %v460_v63 = vshrl.u32 %v419_v54, 16  ;;  %v457_v4 = vor.u32 %v454_v62, %v417_v48 }
 0x179   :  { %642 = vmatprep.mubr.bf16.mxu1 %v446_v57 }
 0x17a   :  { %643 = vmatmul.mubr.bf16.vlgmr.msra.gmra.mrb[0].mxu1 %v434_v60  ;;  %v464_v0 = vshrl.u32 %v422_v58, 16  ;;  %v467_v2 = vshll.u32 %v422_v58, 16  ;;  %v462_v5 = vrot.slane %v460_v63, 7  ;;  %v458_v8 = vsel %vm160_vm0, %v450_v3, %v457_v4 }
 0x17b   :  { %1410 = vmatpush3.bf16.msra.mxu1 %v1556_v56 }
 0x17c   :  { %v466_v1 = vrot.slane %v464_v0, 7  ;;  %1411 = vmatprep.subr.bf16.mxu1 %v1557_v59  ;;  %v795_v0 = vld [vmem:[#allocation2] sm:$0x80] }
 0x17d   :  { %v808_v3 = vrot.slane %v795_v0, 7  ;;  %v1326_v0 = vld [vmem:[%s2022_s10] ss:$0 sm:$0xff]  ;;  %s1760_s10 = smov [#allocation14]  }
 0x17e   :  { %v469_v6 = vor.u32 %v467_v2, %v466_v1  ;;  %s1245_s17 = sshll.u32 %s1760_s10, 4  ;;  %s1246_s17 = int_to_ptr.vmem [resolvable:$true] %s1245_s17 }
 0x17f   :  { %1412 = vmatpush3.bf16.msra.mxu1 %v1558_v9  ;;  %s1719_s5 = scalar_lea.vmem %s1246_s17, 512  ;;  %p1724_p7 = scmp.lt.s32.totalorder %s1246_s17, %s1246_s17 }
 0x180   :  { %v470_v7 = vsel %vm160_vm0, %v462_v5, %v469_v6  ;;  %v1950_v10 = vpop.f32.mrb[8].mxu0  ;;  %1413 = vmatprep.subr.bf16.mxu1 %v1559_v11  ;;  %p1720_p6 = scmp.ne.s32.totalorder %s1246_s17, %s1719_s5  ;;  %p1725_p8 = scmp.lt.s32.totalorder %s1719_s5, %s1719_s5 }
 0x181   :  { %650 = vmatprep.mubr.bf16.mxu1 %v470_v7  ;;  %v768_v12 = vpop.f32.mrb[9].mxu0  ;;  %v777_v56 = vadd.f32 %v1950_v10, %v1296_v34 }
 0x182   :  { %651 = vmatmul.mubr.bf16.gmra.mrb[4].mxu1 %v458_v8  ;;  %v1952_v14 = vpop.f32.mrb[10].mxu0  ;;  %v769_v39 = vadd.f32 %v1296_v34, %v768_v12  ;;  %v797_v8 = vld [vmem:[#allocation2 + $0x10] sm:$0x80]  ;;  %p1726_p9 = por %p1725_p8, %p1724_p7 }
 0x183   :  { %v771_v15 = vpop.f32.mrb[11].mxu0  ;;  %1414 = vmatpush3.bf16.msra.mxu1 %v1560_v13  ;;  %v780_v60 = vadd.f32 %v1952_v14, %v1296_v34  ;;  %v813_v9 = vrot.slane %v797_v8, 7  ;;  %v1576_v13 = vld [vmem:[#allocation12 + $0x10] sm:$0xff]   ;;  %v1577_v14 = vld [vmem:[#allocation12 + $0x58] sm:$0xff]  }
 0x184   :  { %1415 = vmatprep.subr.bf16.mxu1 %v1561_v16  ;;  %v772_v45 = vadd.f32 %v1296_v34, %v771_v15  ;;  %1442 = vmatpush3.bf16.msra.mxu0 %v1576_v13  ;;  %v1578_v15 = vld [vmem:[#allocation12 + $0x18] sm:$0xff]   ;;  %v1579_v16 = vld [vmem:[#allocation12 + $0x60] sm:$0xff]   ;;  %p1727_p10 = pnand %p1726_p9, %p1720_p6 }
 0x185   :  { %1443 = vmatprep.subr.bf16.mxu0 %v1577_v14 }
 0x187   :  { %1416 = vmatpush3.bf16.msra.mxu1 %v1562_v18  ;;  %v1580_v18 = vld [vmem:[#allocation12 + $0x20] sm:$0xff]  }
 0x188   :  { %1417 = vmatprep.subr.bf16.mxu1 %v1563_v19  ;;  %1444 = vmatpush3.bf16.msra.mxu0 %v1578_v15  ;;  %v1581_v19 = vld [vmem:[#allocation12 + $0x68] sm:$0xff]  }
 0x189   :  { %1445 = vmatprep.subr.bf16.mxu0 %v1579_v16 }
 0x18b   :  { %1418 = vmatpush3.bf16.msra.mxu1 %v1564_v20  ;;  %v1582_v20 = vld [vmem:[#allocation12 + $0x28] sm:$0xff]  }
 0x18c   :  { %1419 = vmatprep.subr.bf16.mxu1 %v1565_v21  ;;  %1446 = vmatpush3.bf16.msra.mxu0 %v1580_v18  ;;  %v1583_v21 = vld [vmem:[#allocation12 + $0x70] sm:$0xff]  }
 0x18d   :  { %1447 = vmatprep.subr.bf16.mxu0 %v1581_v19 }
 0x18f   :  { %1420 = vmatpush3.bf16.msra.mxu1 %v1566_v22  ;;  %v1584_v22 = vld [vmem:[#allocation12 + $0x30] sm:$0xff]  }
 0x190   :  { %1421 = vmatprep.subr.bf16.mxu1 %v1567_v23  ;;  %1448 = vmatpush3.bf16.msra.mxu0 %v1582_v20  ;;  %v1585_v23 = vld [vmem:[#allocation12 + $0x78] sm:$0xff]  }
 0x191   :  { %1449 = vmatprep.subr.bf16.mxu0 %v1583_v21 }
 0x193   :  { %1422 = vmatpush3.bf16.msra.mxu1 %v1568_v24  ;;  %v1586_v24 = vld [vmem:[#allocation12 + $0x38] sm:$0xff]  }
 0x194   :  { %1423 = vmatprep.subr.bf16.mxu1 %v1569_v25  ;;  %1450 = vmatpush3.bf16.msra.mxu0 %v1584_v22 }
 0x195   :  { %1451 = vmatprep.subr.bf16.mxu0 %v1585_v23 }
 0x197   :  { %1424 = vmatpush3.bf16.msra.mxu1 %v1570_v26  ;;  %v1307_v26 = vld [vmem:[%s2020_s8] ss:$0 sm:$0xff] }
 0x198   :  { %1485 = vmatprep.subr.bf16.mxu1 %v1571_v27  ;;  %1452 = vmatpush3.bf16.msra.mxu0 %v1586_v24 }
 0x24d   :  { %v1387_v31 = vpop.f32.mrb[0].mxu1 }
 0x24e   :  { %v1388_v33 = vpop.f32.mrb[1].mxu1 }
 0x24f   :  { %v1389_v35 = vadd.f32 %v1388_v33, %v1387_v31  ;;  %v1390_v36 = vpop.f32.mrb[2].mxu1 }
 0x250   :  { %v1391_v37 = vpop.f32.mrb[3].mxu1 }
 0x251   :  { %v645_v38 = vadd.f32 %v1389_v35, %v1279_v32  ;;  %v1392_v40 = vadd.f32 %v1391_v37, %v1390_v36 }
 0x253   :  { %v659_v41 = vmax.f32 %v645_v38, 0.0  ;;  %v648_v42 = vadd.f32 %v1392_v40, %v1279_v32 }
 0x255   :  { %v1960_v43 = vadd.f32 %v769_v39, %v659_v41  ;;  %v660_v44 = vmax.f32 %v648_v42, 0.0  ;;  %v1393_v46 = vpop.f32.mrb[4].mxu1 }
 0x256   :  { %v1394_v47 = vpop.f32.mrb[5].mxu1 }
 0x257   :  { %v1962_v48 = vadd.f32 %v772_v45, %v660_v44  ;;  %v1395_v49 = vadd.f32 %v1394_v47, %v1393_v46  ;;  %v1396_v50 = vpop.f32.mrb[6].mxu1  ;;  %v787_v52 = vmax.f32 %v1960_v43, 0.0  ;;  %v1014_v45 = vld [vmem:[#allocation2] sm:$0x80] }
 0x258   :  { %v1397_v51 = vpop.f32.mrb[7].mxu1 }
 0x259   :  { %v788_v53 = vmax.f32 %v1962_v48, 0.0  ;;  %v653_v54 = vadd.f32 %v1395_v49, %v1279_v32  ;;  %v1398_v55 = vadd.f32 %v1397_v51, %v1396_v50  ;;  %v1026_v50 = vrot.slane %v1014_v45, 7 }
 0x25b   :  { %v661_v57 = vmax.f32 %v653_v54, 0.0  ;;  %v656_v58 = vadd.f32 %v1398_v55, %v1279_v32  ;;  %v791_v59 = vpack.c.bf16 %v788_v53, %v787_v52 }
 0x25d   :  { %v1972_v61 = vadd.f32 %v777_v56, %v661_v57  ;;  %v662_v62 = vmax.f32 %v656_v58, 0.0  ;;  %793 = vst [vmem:[#allocation2 + $0x8] sm:$0xff] %v791_v59  ;;  %989 = vmatprep.mubr.bf16.mxu1 %v791_v59  ;;  %v1016_v56 = vld [vmem:[#allocation2 + $0x10] sm:$0x80] }
 0x25e   :  { %v1031_v57 = vrot.slane %v1016_v56, 7 }
 0x25f   :  { %v1974_v63 = vadd.f32 %v780_v60, %v662_v62  ;;  %v789_v1 = vmax.f32 %v1972_v61, 0.0 }
 0x261   :  { %v790_v2 = vmax.f32 %v1974_v63, 0.0 }
 0x263   :  { %v792_v4 = vpack.c.bf16 %v790_v2, %v789_v1 }
 0x264   :  { %v796_v5 = vld [vmem:[#allocation2 + $0x8] sm:$0x7f] }
 0x265   :  { %v809_v6 = vrot.slane %v796_v5, 7  ;;  %794 = vst [vmem:[#allocation2 + $0x18] sm:$0xff] %v792_v4 }
 0x267   :  { %v810_v7 = vsel %vm807_vm1, %v808_v3, %v809_v6 }
 0x268   :  { %990 = vmatmul.mubr.bf16.vlgmr.msra.gmra.mrb[8].mxu1 %v810_v7 }
 0x269   :  { %997 = vmatprep.mubr.bf16.mxu1 %v792_v4  ;;  %1493 = vmatpush3.bf16.msra.mxu1 %v1572_v28 }
 0x26a   :  { %1486 = vmatprep.subr.bf16.mxu1 %v1573_v17 }
 0x26c   :  { %v798_v10 = vld [vmem:[#allocation2 + $0x18] sm:$0x7f] }
 0x26d   :  { %v814_v11 = vrot.slane %v798_v10, 7  ;;  %1494 = vmatpush3.bf16.msra.mxu1 %v1574_v29 }
 0x26e   :  { %1487 = vmatprep.subr.bf16.mxu1 %v1575_v30 }
 0x26f   :  { %v815_v12 = vsel %vm807_vm1, %v813_v9, %v814_v11 }
 0x270   :  { %998 = vmatmul.mubr.bf16.gmra.mrb[12].mxu1 %v815_v12 }
 0x271   :  { %1495 = vmatpush3.bf16.msra.mxu1 %v1576_v13 }
 0x272   :  { %1488 = vmatprep.subr.bf16.mxu1 %v1577_v14 }
 0x275   :  { %1496 = vmatpush3.bf16.msra.mxu1 %v1578_v15 }
 0x276   :  { %1489 = vmatprep.subr.bf16.mxu1 %v1579_v16 }
 0x279   :  { %1497 = vmatpush3.bf16.msra.mxu1 %v1580_v18 }
 0x27a   :  { %1490 = vmatprep.subr.bf16.mxu1 %v1581_v19 }
 0x27d   :  { %1498 = vmatpush3.bf16.msra.mxu1 %v1582_v20 }
 0x27e   :  { %1491 = vmatprep.subr.bf16.mxu1 %v1583_v21 }
 0x281   :  { %1499 = vmatpush3.bf16.msra.mxu1 %v1584_v22 }
 0x282   :  { %1492 = vmatprep.subr.bf16.mxu1 %v1585_v23 }
 0x285   :  { %1500 = vmatpush3.bf16.msra.mxu1 %v1586_v24 }
 0x33b   :  { %v1425_v25 = vpop.f32.mrb[8].mxu1 }
 0x33c   :  { %v1426_v27 = vpop.f32.mrb[9].mxu1 }
 0x33d   :  { %v1427_v28 = vadd.f32 %v1426_v27, %v1425_v25  ;;  %v1428_v17 = vpop.f32.mrb[10].mxu1 }
 0x33e   :  { %v1429_v29 = vpop.f32.mrb[11].mxu1 }
 0x33f   :  { %v992_v30 = vadd.f32 %v1427_v28, %v1307_v26  ;;  %v1430_v31 = vadd.f32 %v1429_v29, %v1428_v17 }
 0x341   :  { %v995_v32 = vadd.f32 %v1430_v31, %v1307_v26  ;;  %v1006_v33 = vmax.f32 %v992_v30, 0.0 }
 0x343   :  { %v1007_v34 = vmax.f32 %v995_v32, 0.0  ;;  %v1431_v35 = vpop.f32.mrb[12].mxu1 }
 0x344   :  { %v1432_v36 = vpop.f32.mrb[13].mxu1 }
 0x345   :  { %v1433_v37 = vadd.f32 %v1432_v36, %v1431_v35  ;;  %v1434_v38 = vpop.f32.mrb[14].mxu1  ;;  %v1010_v39 = vpack.c.bf16 %v1007_v34, %v1006_v33 }
 0x346   :  { %v1435_v40 = vpop.f32.mrb[15].mxu1 }
 0x347   :  { %v1000_v41 = vadd.f32 %v1433_v37, %v1307_v26  ;;  %v1436_v42 = vadd.f32 %v1435_v40, %v1434_v38  ;;  %1012 = vst [vmem:[#allocation2 + $0x8] sm:$0xff] %v1010_v39  ;;  %1207 = vmatprep.mubr.bf16.mxu0 %v1010_v39 }
 0x349   :  { %v1003_v44 = vadd.f32 %v1436_v42, %v1307_v26  ;;  %v1008_v46 = vmax.f32 %v1000_v41, 0.0 }
 0x34b   :  { %v1009_v47 = vmax.f32 %v1003_v44, 0.0 }
 0x34d   :  { %v1011_v49 = vpack.c.bf16 %v1009_v47, %v1008_v46 }
 0x34e   :  { %v1015_v51 = vld [vmem:[#allocation2 + $0x8] sm:$0x7f] }
 0x34f   :  { %1013 = vst [vmem:[#allocation2 + $0x18] sm:$0xff] %v1011_v49  ;;  %1215 = vmatprep.mubr.bf16.mxu1 %v1011_v49  ;;  %v1027_v54 = vrot.slane %v1015_v51, 7 }
 0x351   :  { %v1028_v55 = vsel %vm807_vm1, %v1026_v50, %v1027_v54 }
 0x352   :  { %1208 = vmatmul.mubr.bf16.vlgmr.msra.gmra.mrb[12].mxu0 %v1028_v55 }
 0x356   :  { %v1017_v58 = vld [vmem:[#allocation2 + $0x18] sm:$0x7f] }
 0x357   :  { %v1032_v59 = vrot.slane %v1017_v58, 7 }
 0x359   :  { %v1033_v60 = vsel %vm807_vm1, %v1031_v57, %v1032_v59 }
 0x35a   :  { %1216 = vmatmul.mubr.bf16.vlgmr.msra.gmra.mrb[16].mxu1 %v1033_v60 }
 0x425   :  { %v1453_v62 = vpop.f32.mrb[12].mxu0 }
 0x426   :  { %v1454_v3 = vpop.f32.mrb[13].mxu0 }
 0x427   :  { %v1455_v4 = vadd.f32 %v1454_v3, %v1453_v62  ;;  %v1456_v5 = vpop.f32.mrb[14].mxu0 }
 0x428   :  { %v1457_v6 = vpop.f32.mrb[15].mxu0 }
 0x429   :  { %v1210_v7 = vadd.f32 %v1455_v4, %v1326_v0  ;;  %v1458_v8 = vadd.f32 %v1457_v6, %v1456_v5 }
 0x42b   :  { %v1224_v9 = vmax.f32 %v1210_v7, 0.0  ;;  %v1213_v10 = vadd.f32 %v1458_v8, %v1326_v0 }
 0x42d   :  { %v1228_v11 = vadd.f32 %v1224_v9, %v787_v52  ;;  %v1225_v12 = vmax.f32 %v1213_v10, 0.0  ;;  %v1459_v13 = vpop.f32.mrb[16].mxu1 }
 0x42e   :  { %v1460_v14 = vpop.f32.mrb[17].mxu1 }
 0x42f   :  { %v1232_v15 = vmax.f32 %v1228_v11, 0.0  ;;  %v1229_v16 = vadd.f32 %v1225_v12, %v788_v53  ;;  %v1461_v18 = vadd.f32 %v1460_v14, %v1459_v13  ;;  %v1462_v19 = vpop.f32.mrb[18].mxu1 }
 0x430   :  { %v1463_v20 = vpop.f32.mrb[19].mxu1 }
 0x431   :  { %1236 = vst [vmem:[#allocation14] sm:$0xff] %v1232_v15  ;;  %v1233_v21 = vmax.f32 %v1229_v16, 0.0  ;;  %v1218_v22 = vadd.f32 %v1461_v18, %v1326_v0  ;;  %v1464_v23 = vadd.f32 %v1463_v20, %v1462_v19 }
 0x433   :  { %1237 = vst [vmem:[#allocation14 + $0x8] sm:$0xff] %v1233_v21  ;;  %v1226_v24 = vmax.f32 %v1218_v22, 0.0  ;;  %v1221_v25 = vadd.f32 %v1464_v23, %v1326_v0 }
 0x435   :  { %v1230_v43 = vadd.f32 %v1226_v24, %v789_v1  ;;  %v1227_v52 = vmax.f32 %v1221_v25, 0.0 }
 0x437   :  { %v1234_v26 = vmax.f32 %v1230_v43, 0.0  ;;  %v1231_v48 = vadd.f32 %v1227_v52, %v790_v2 }
 0x439   :  { %1238 = vst [vmem:[#allocation14 + $0x10] sm:$0xff] %v1234_v26  ;;  %v1235_v53 = vmax.f32 %v1231_v48, 0.0 }
 0x43b   :  { %1239 = vst [vmem:[#allocation14 + $0x18] sm:$0xff] %v1235_v53 }
 0x43c   :  { %1730 = shalt.err (!%p1727_p10)
}
 0x43d   :  { %s1731_s21 = scalar_lea.hbm %s2023_s11, 512 }
 0x43e   :  { %p1732_p11 = scmp.ne.s32.totalorder %s2023_s11, %s1731_s21  ;;  %p1735_p12 = scmp.lt.u32.totalorder %s1731_s21, %s2023_s11 }
 0x440   :  { %p1737_p13 = pnand %p1735_p12, %p1732_p11 }
 0x442   :  { %1740 = shalt.err (!%p1737_p13)
}
 0x443   :  { %s1761_s1 = smov 128   ;;  %s1762_s18 = smov 8  }
 0x444   :  { %1251 = dma.vmem_to_hbm [thread:$0]  %s1246_s17, 512, %s2023_s11, [#allocation5], %s1761_s1, %s1761_s1, %s1762_s18  }
 0x445   :  { %1749 = dma.done.wait [#allocation5], 512  }
 0x446   :  { %1750 = vsyncadd [#allocation5], 4294966784 }
 0x447   :  { %1255 = vsyncpa [#allocation4], 1 }
 0x448   :  { %1256 = vsyncpa [#allocation7], 1 }
 0x449   :  { %1257 = vsyncpa [#allocation10], 1 }
 0x44a   :  { %1258 = vsyncpa [#allocation13], 1 }
 0x44b   :  { %1259 = vsyncpa [#allocation5], 1 }

</bundles_post_ra>
